<compile_context>
chip_gen: v7x
topology: tpu7x:2x2x1
jax: 0.10.0
libtpu: 0.0.40
codegen_flags: <defaults>
</compile_context>

<pallas_src>
import functools

import jax
import jax.numpy as jnp
from jax.experimental import pallas as pl
from jax.experimental.pallas import tpu as pltpu


def _actor_kernel(x_ref, w1_ref, b1_ref, w2_ref, b2_ref, w3_ref, b3_ref, o_ref):
    # bf16 MXU inputs, f32 accumulation; bias/ReLU/tanh in f32 (v5e-safe),
    # single downcast to bf16 between layers and at the lane-dense output store.
    x = x_ref[...]                                                     # (TB, S) bf16
    h1 = jnp.dot(x, w1_ref[...], preferred_element_type=jnp.float32)
    h1 = jnp.maximum(h1 + b1_ref[...], 0.0).astype(jnp.bfloat16)       # (TB, 128)
    h2 = jnp.dot(h1, w2_ref[...], preferred_element_type=jnp.float32)
    h2 = jnp.maximum(h2 + b2_ref[...], 0.0).astype(jnp.bfloat16)       # (TB, 256)
    y = jnp.dot(h2, w3_ref[...], preferred_element_type=jnp.float32) + b3_ref[...]
    o_ref[...] = jnp.tanh(y).astype(o_ref.dtype)                       # (TB, 128) bf16, unmasked vst


def _round_up(x, m):
    return ((x + m - 1) // m) * m


_MAX_TB = 2048  # rows/step: big enough to amortize ~0.35us step overhead, few MB of VMEM


def _pick_batch_tile(batch):
    if batch < 16:
        # Single step covering the (sublane-rounded) batch; grid overhead is one step.
        return _round_up(batch, 8)
    # Guarantee >= 2 grid steps so the "parallel" batch axis can be split across
    # v7x's two TensorCores, capped at _MAX_TB rows to stay VMEM-friendly.
    return min(_round_up(pl.cdiv(batch, 2), 8), _MAX_TB)


@functools.partial(jax.jit, static_argnames=("action_size",))
def actor_forward(state, action_size, w1, b1, w2, b2, w3, b3):
    B, S = state.shape
    H1 = w1.shape[1]
    H2 = w2.shape[1]
    A_pad = w3.shape[1]  # zero-padded to a multiple of 128 at init (lane-dense output)

    # Halve the input HBM stream; the kernel consumes bf16 anyway.
    x = state.astype(jnp.bfloat16)

    TB = _pick_batch_tile(B)
    grid = (pl.cdiv(B, TB),)  # no wrapper pad: Pallas masks the edge block's stores

    # Advisory cost hint so XLA can overlap this us-scale kernel with neighbours.
    flops = 2 * B * (S * H1 + H1 * H2 + H2 * A_pad)
    bytes_accessed = (
        B * S * 2                                  # x (bf16)
        + (S * H1 + H1 * H2 + H2 * A_pad) * 2      # bf16 weights
        + (H1 + H2 + A_pad) * 4                    # f32 biases
        + B * A_pad * 2                            # bf16 output
    )
    cost = pl.CostEstimate(flops=flops,
                           transcendentals=B * A_pad,
                           bytes_accessed=bytes_accessed)

    out = pl.pallas_call(
        _actor_kernel,
        out_shape=jax.ShapeDtypeStruct((B, A_pad), jnp.bfloat16),
        grid=grid,
        in_specs=[
            pl.BlockSpec((TB, S), lambda i: (i, 0)),       # x: tiled over batch
            pl.BlockSpec((S, H1), lambda i: (0, 0)),       # weights/biases: constant block
            pl.BlockSpec((1, H1), lambda i: (0, 0)),       #   index -> VMEM-resident, no re-DMA
            pl.BlockSpec((H1, H2), lambda i: (0, 0)),
            pl.BlockSpec((1, H2), lambda i: (0, 0)),
            pl.BlockSpec((H2, A_pad), lambda i: (0, 0)),
            pl.BlockSpec((1, A_pad), lambda i: (0, 0)),
        ],
        out_specs=pl.BlockSpec((TB, A_pad), lambda i: (i, 0)),
        compiler_params=pltpu.CompilerParams(
            dimension_semantics=("parallel",),             # shard batch steps across v7x's 2 TCs
            vmem_limit_bytes=32 * 1024 * 1024),            # headroom for TB=2048 on v5e (16 MiB default)
        cost_estimate=cost,
    )(x, w1, b1, w2, b2, w3, b3)

    # Slice off zero-padded action columns; return f32 like the PyTorch module.
    return out[:, :action_size].astype(jnp.float32)


def init_params(key, state_size, action_size):
    """PyTorch-style nn.Linear default init: U(-1/sqrt(fan_in), 1/sqrt(fan_in)).

    Weights stored transposed (fan_in, fan_out) in bf16 (MXU inputs); biases f32.
    Final layer zero-padded to a lane-dense multiple of 128 output columns; the
    wrapper slices back to `action_size` (padded columns produce tanh(0)=0).
    """
    def linear(key, fan_in, fan_out, pad_out=None):
        kw, kb = jax.random.split(key)
        bound = 1.0 / jnp.sqrt(fan_in)
        w = jax.random.uniform(kw, (fan_in, fan_out), jnp.float32, -bound, bound)
        b = jax.random.uniform(kb, (1, fan_out), jnp.float32, -bound, bound)
        if pad_out is not None and pad_out > fan_out:
            w = jnp.pad(w, ((0, 0), (0, pad_out - fan_out)))
            b = jnp.pad(b, ((0, 0), (0, pad_out - fan_out)))
        return w.astype(jnp.bfloat16), b  # bf16 weights, f32 biases

    k1, k2, k3 = jax.random.split(key, 3)
    a_pad = max(128, _round_up(action_size, 128))
    w1, b1 = linear(k1, state_size, 128)
    w2, b2 = linear(k2, 128, 256)
    w3, b3 = linear(k3, 256, action_size, pad_out=a_pad)
    return w1, b1, w2, b2, w3, b3


if __name__ == "__main__":
    key = jax.random.PRNGKey(0)
    k_params, k_state = jax.random.split(key)

    batch, state_size, action_size = 8, 16, 4
    params = init_params(k_params, state_size, action_size)
    state = jax.random.normal(k_state, (batch, state_size), jnp.float32)

    out = actor_forward(state, action_size, *params)
    out = jax.block_until_ready(out)

    # Pure-JAX reference with the same bf16-input / f32-accumulate / bf16-output math.
    w1, b1, w2, b2, w3, b3 = params
    xb = state.astype(jnp.bfloat16)
    h1 = jnp.maximum(
        jnp.dot(xb, w1, preferred_element_type=jnp.float32) + b1, 0.0).astype(jnp.bfloat16)
    h2 = jnp.maximum(
        jnp.dot(h1, w2, preferred_element_type=jnp.float32) + b2, 0.0).astype(jnp.bfloat16)
    ref = jnp.tanh(jnp.dot(h2, w3, preferred_element_type=jnp.float32) + b3)
    ref = ref.astype(jnp.bfloat16).astype(jnp.float32)[:, :action_size]

    assert out.shape == (batch, action_size)
    assert out.dtype == jnp.float32
    assert jnp.allclose(out, ref, atol=2e-2, rtol=2e-2)

    print("KERNEL_OK")
</pallas_src>

<mosaic_0001>
module attributes {stable_mosaic.version = 11 : i64} {
  func.func @_actor_kernel(%arg0: i32, %arg1: memref<8x16xbf16, #tpu.memory_space<vmem>>, %arg2: memref<16x128xbf16, #tpu.memory_space<vmem>>, %arg3: memref<1x128xf32, #tpu.memory_space<vmem>>, %arg4: memref<128x256xbf16, #tpu.memory_space<vmem>>, %arg5: memref<1x256xf32, #tpu.memory_space<vmem>>, %arg6: memref<256x128xbf16, #tpu.memory_space<vmem>>, %arg7: memref<1x128xf32, #tpu.memory_space<vmem>>, %arg8: memref<8x128xbf16, #tpu.memory_space<vmem>>) attributes {dimension_semantics = [#tpu.dimension_semantics<parallel>], iteration_bounds = array<i64: 1>, scalar_prefetch = 0 : i64, scratch_operands = 0 : i64, tpu.core_type = #tpu.core_type<tc>, window_params = [{transform_indices = @transform_0, window_bounds = array<i64: 8, 16>}, {pipeline_mode = #tpu.pipeline_mode<synchronous>, transform_indices = @transform_1, window_bounds = array<i64: 16, 128>}, {pipeline_mode = #tpu.pipeline_mode<synchronous>, transform_indices = @transform_2, window_bounds = array<i64: 1, 128>}, {pipeline_mode = #tpu.pipeline_mode<synchronous>, transform_indices = @transform_3, window_bounds = array<i64: 128, 256>}, {pipeline_mode = #tpu.pipeline_mode<synchronous>, transform_indices = @transform_4, window_bounds = array<i64: 1, 256>}, {pipeline_mode = #tpu.pipeline_mode<synchronous>, transform_indices = @transform_5, window_bounds = array<i64: 256, 128>}, {pipeline_mode = #tpu.pipeline_mode<synchronous>, transform_indices = @transform_6, window_bounds = array<i64: 1, 128>}, {transform_indices = @transform_7, window_bounds = array<i64: 8, 128>}]} {
    %c0 = arith.constant 0 : index
    %c0_0 = arith.constant 0 : index
    %0 = vector.load %arg1[%c0, %c0_0] : memref<8x16xbf16, #tpu.memory_space<vmem>>, vector<8x16xbf16>
    %c0_1 = arith.constant 0 : index
    %c0_2 = arith.constant 0 : index
    %1 = vector.load %arg2[%c0_1, %c0_2] : memref<16x128xbf16, #tpu.memory_space<vmem>>, vector<16x128xbf16>
    %cst = arith.constant dense<0.000000e+00> : vector<8x128xf32>
    %2 = tpu.matmul %0, %1, %cst {dimension_numbers = #tpu.dot_dimension_numbers<[1], [0], [0], [1], [0, 0, 1, 1], [], []>} : vector<8x16xbf16>, vector<16x128xbf16>, vector<8x128xf32> -> vector<8x128xf32>
    %c0_3 = arith.constant 0 : index
    %c0_4 = arith.constant 0 : index
    %3 = vector.load %arg3[%c0_3, %c0_4] : memref<1x128xf32, #tpu.memory_space<vmem>>, vector<1x128xf32>
    %4 = vector.broadcast %3 : vector<1x128xf32> to vector<8x128xf32>
    %5 = arith.addf %2, %4 : vector<8x128xf32>
    %cst_5 = arith.constant 0.000000e+00 : f32
    %6 = vector.broadcast %cst_5 : f32 to vector<8x128xf32>
    %7 = arith.maximumf %5, %6 : vector<8x128xf32>
    %8 = arith.truncf %7 : vector<8x128xf32> to vector<8x128xbf16>
    %c0_6 = arith.constant 0 : index
    %c0_7 = arith.constant 0 : index
    %9 = vector.load %arg4[%c0_6, %c0_7] : memref<128x256xbf16, #tpu.memory_space<vmem>>, vector<128x256xbf16>
    %cst_8 = arith.constant dense<0.000000e+00> : vector<8x256xf32>
    %10 = tpu.matmul %8, %9, %cst_8 {dimension_numbers = #tpu.dot_dimension_numbers<[1], [0], [0], [1], [0, 0, 1, 1], [], []>} : vector<8x128xbf16>, vector<128x256xbf16>, vector<8x256xf32> -> vector<8x256xf32>
    %c0_9 = arith.constant 0 : index
    %c0_10 = arith.constant 0 : index
    %11 = vector.load %arg5[%c0_9, %c0_10] : memref<1x256xf32, #tpu.memory_space<vmem>>, vector<1x256xf32>
    %12 = vector.broadcast %11 : vector<1x256xf32> to vector<8x256xf32>
    %13 = arith.addf %10, %12 : vector<8x256xf32>
    %cst_11 = arith.constant 0.000000e+00 : f32
    %14 = vector.broadcast %cst_11 : f32 to vector<8x256xf32>
    %15 = arith.maximumf %13, %14 : vector<8x256xf32>
    %16 = arith.truncf %15 : vector<8x256xf32> to vector<8x256xbf16>
    %c0_12 = arith.constant 0 : index
    %c0_13 = arith.constant 0 : index
    %17 = vector.load %arg6[%c0_12, %c0_13] : memref<256x128xbf16, #tpu.memory_space<vmem>>, vector<256x128xbf16>
    %cst_14 = arith.constant dense<0.000000e+00> : vector<8x128xf32>
    %18 = tpu.matmul %16, %17, %cst_14 {dimension_numbers = #tpu.dot_dimension_numbers<[1], [0], [0], [1], [0, 0, 1, 1], [], []>} : vector<8x256xbf16>, vector<256x128xbf16>, vector<8x128xf32> -> vector<8x128xf32>
    %c0_15 = arith.constant 0 : index
    %c0_16 = arith.constant 0 : index
    %19 = vector.load %arg7[%c0_15, %c0_16] : memref<1x128xf32, #tpu.memory_space<vmem>>, vector<1x128xf32>
    %20 = vector.broadcast %19 : vector<1x128xf32> to vector<8x128xf32>
    %21 = arith.addf %18, %20 : vector<8x128xf32>
    %22 = math.tanh %21 : vector<8x128xf32>
    %23 = arith.truncf %22 : vector<8x128xf32> to vector<8x128xbf16>
    %c0_17 = arith.constant 0 : index
    %c0_18 = arith.constant 0 : index
    %24 = vector.load %arg8[%c0_17, %c0_18] : memref<8x128xbf16, #tpu.memory_space<vmem>>, vector<8x128xbf16>
    tpu.vector_store %arg8[%c0_17, %c0_18], %23 {strides = array<i32>} : memref<8x128xbf16, #tpu.memory_space<vmem>>, vector<8x128xbf16>,
    return
  }
  func.func @transform_0(%arg0: i32) -> (i32, i32) {
    %c0_i32 = arith.constant 0 : i32
    %c0_i32_0 = arith.constant 0 : i32
    return %arg0, %c0_i32 : i32, i32
  }
  func.func @transform_1(%arg0: i32) -> (i32, i32) {
    %c0_i32 = arith.constant 0 : i32
    %c0_i32_0 = arith.constant 0 : i32
    %c0_i32_1 = arith.constant 0 : i32
    return %c0_i32, %c0_i32_0 : i32, i32
  }
  func.func @transform_2(%arg0: i32) -> (i32, i32) {
    %c0_i32 = arith.constant 0 : i32
    %c0_i32_0 = arith.constant 0 : i32
    %c0_i32_1 = arith.constant 0 : i32
    return %c0_i32, %c0_i32_0 : i32, i32
  }
  func.func @transform_3(%arg0: i32) -> (i32, i32) {
    %c0_i32 = arith.constant 0 : i32
    %c0_i32_0 = arith.constant 0 : i32
    %c0_i32_1 = arith.constant 0 : i32
    return %c0_i32, %c0_i32_0 : i32, i32
  }
  func.func @transform_4(%arg0: i32) -> (i32, i32) {
    %c0_i32 = arith.constant 0 : i32
    %c0_i32_0 = arith.constant 0 : i32
    %c0_i32_1 = arith.constant 0 : i32
    return %c0_i32, %c0_i32_0 : i32, i32
  }
  func.func @transform_5(%arg0: i32) -> (i32, i32) {
    %c0_i32 = arith.constant 0 : i32
    %c0_i32_0 = arith.constant 0 : i32
    %c0_i32_1 = arith.constant 0 : i32
    return %c0_i32, %c0_i32_0 : i32, i32
  }
  func.func @transform_6(%arg0: i32) -> (i32, i32) {
    %c0_i32 = arith.constant 0 : i32
    %c0_i32_0 = arith.constant 0 : i32
    %c0_i32_1 = arith.constant 0 : i32
    return %c0_i32, %c0_i32_0 : i32, i32
  }
  func.func @transform_7(%arg0: i32) -> (i32, i32) {
    %c0_i32 = arith.constant 0 : i32
    %c0_i32_0 = arith.constant 0 : i32
    return %arg0, %c0_i32 : i32, i32
  }
}

</mosaic_0001>

<bundles_post_ra>
// kernel: actor_forward.1
= control target key start
LH: loop header
LB: loop body
LE: loop exit
PB: predicated region body
PF: predicated region fallthrough
CT: control target
= control target key end

     0   :  { %12 = vsyncpa [#allocation3], 0  ;;  %s711_s0 = inlined_call_operand.vmem [shape: bf16[8,16], index: 0, kind: input, shape index: {}]   ;;  %s712_s1 = inlined_call_operand.vmem [shape: bf16[16,128], index: 1, kind: input, shape index: {}]   ;;  %s713_s2 = inlined_call_operand.vmem [shape: f32[1,128], index: 2, kind: input, shape index: {}]   ;;  %s714_s3 = inlined_call_operand.hbm [shape: bf16[128,256], index: 3, kind: input, shape index: {}]   ;;  %s715_s4 = inlined_call_operand.vmem [shape: f32[1,256], index: 4, kind: input, shape index: {}]   ;;  %s716_s5 = inlined_call_operand.hbm [shape: bf16[256,128], index: 5, kind: input, shape index: {}]   ;;  %s717_s6 = inlined_call_operand.vmem [shape: f32[1,128], index: 6, kind: input, shape index: {}]   ;;  %s718_s7 = inlined_call_operand.vmem [shape: bf16[8,128], index: 7, kind: output, shape index: {}]  }
   0x1   :  { %13 = vsyncpa [#allocation5], 0  ;;  %s620_s24 = smov [#allocation2]   ;;  %s572_s28 = scalar_lea.hbm %s714_s3, 2048 }
   0x2   :  { %s25_s25 = sshll.u32 %s620_s24, 4  ;;  %p573_p0 = scmp.ne.s32.totalorder %s714_s3, %s572_s28  ;;  %s26_s25 = int_to_ptr.vmem [resolvable:$true] %s25_s25 }
   0x3   :  { %p576_p1 = scmp.lt.u32.totalorder %s572_s28, %s714_s3 }
   0x5   :  { %p578_p2 = pnand %p576_p1, %p573_p0 }
   0x7   :  { %581 = shalt.err (!%p578_p2)
}
   0x8   :  { %s582_s10 = scalar_lea.vmem %s26_s25, 2048  ;;  %p587_p4 = scmp.lt.s32.totalorder %s26_s25, %s26_s25 }
   0x9   :  { %p583_p3 = scmp.ne.s32.totalorder %s26_s25, %s582_s10  ;;  %p588_p5 = scmp.lt.s32.totalorder %s582_s10, %s582_s10 }
   0xb   :  { %p589_p6 = por %p588_p5, %p587_p4 }
   0xd   :  { %p590_p7 = pnand %p589_p6, %p583_p3 }
   0xf   :  { %593 = shalt.err (!%p590_p7)
}
  0x10   :  { %s621_s11 = smov 128   ;;  %s622_s12 = smov 8  }
  0x11   :  { %31 = dma.hbm_to_vmem [thread:$0]  %s714_s3, 2048, %s26_s25, [#allocation3], %s621_s11, %s621_s11, %s622_s12  }
  0x12   :  { %s623_s15 = smov [#allocation4]   ;;  %s594_s19 = scalar_lea.hbm %s716_s5, 2048 }
  0x13   :  { %s39_s16 = sshll.u32 %s623_s15, 4  ;;  %p595_p8 = scmp.ne.s32.totalorder %s716_s5, %s594_s19  ;;  %s40_s16 = int_to_ptr.vmem [resolvable:$true] %s39_s16 }
  0x14   :  { %p598_p9 = scmp.lt.u32.totalorder %s594_s19, %s716_s5 }
  0x16   :  { %p600_p10 = pnand %p598_p9, %p595_p8 }
  0x18   :  { %603 = shalt.err (!%p600_p10)
}
  0x19   :  { %s604_s24 = scalar_lea.vmem %s40_s16, 2048  ;;  %p609_p12 = scmp.lt.s32.totalorder %s40_s16, %s40_s16 }
  0x1a   :  { %p605_p11 = scmp.ne.s32.totalorder %s40_s16, %s604_s24  ;;  %p610_p13 = scmp.lt.s32.totalorder %s604_s24, %s604_s24 }
  0x1c   :  { %p611_p0 = por %p610_p13, %p609_p12 }
  0x1e   :  { %p612_p1 = pnand %p611_p0, %p605_p11 }
  0x20   :  { %615 = shalt.err (!%p612_p1)
}
  0x21   :  { %s624_s3 = smov 64   ;;  %s625_s25 = smov 4  }
  0x22   :  { %45 = dma.hbm_to_vmem [thread:$0]  %s716_s5, 2048, %s40_s16, [#allocation5], %s624_s3, %s624_s3, %s625_s25  }
  0x23   :  { %616 = dma.done.wait [#allocation3], 2048  }
  0x24   :  { %617 = vsyncadd [#allocation3], 4294965248 }
  0x25   :  { %618 = dma.done.wait [#allocation5], 2048  }
  0x26   :  { %619 = vsyncadd [#allocation5], 4294965248  ;;  %v626_v0 = vmov 0.0   ;;  %vm627_vm0 = vmmov 0   ;;  %v529_v1 = vld [vmem:[%s712_s1] sm:$0xff]   ;;  %vm71_vm1 = vcmask 130048   ;;  %v135_v44 = vlaneseq }
  0x27   :  { %514 = vmatprep.subr.bf16.mxu0 %v626_v0  ;;  %516 = vmatprep.mubr.msk.bf16.mxu0 %vm627_vm0, %v626_v0  ;;  %v55_v2 = vld [vmem:[%s711_s0] sm:$0xf]  ;;  %v530_v3 = vld [vmem:[#allocation2 + $0x4] ss:$8 sps:$4 sm:$0xff]   ;;  %v533_v5 = vld [vmem:[#allocation2 + $0x14] ss:$8 sps:$4 sm:$0xff]  }
  0x28   :  { %515 = vmatpush3.bf16.msra.mxu0 %v529_v1  ;;  %v532_v4 = vld [vmem:[#allocation2] ss:$8 sps:$4 sm:$0xff]   ;;  %225 = vmatprep.subr.bf16.mxu1 %v530_v3  ;;  %v535_v6 = vld [vmem:[#allocation2 + $0x10] ss:$8 sps:$4 sm:$0xff]   ;;  %v536_v7 = vld [vmem:[#allocation2 + $0x24] ss:$8 sps:$4 sm:$0xff]  }
  0x29   :  { %226 = vmatpush1.bf16.msra.mxu1 %v532_v4  ;;  %v538_v8 = vld [vmem:[#allocation2 + $0x20] ss:$8 sps:$4 sm:$0xff]   ;;  %v539_v9 = vld [vmem:[#allocation2 + $0x34] ss:$8 sps:$4 sm:$0xff]   ;;  %v541_v10 = vld [vmem:[#allocation2 + $0x30] ss:$8 sps:$4 sm:$0xff]  }
  0x2a   :  { %227 = vmatprep.subr.bf16.mxu1 %v533_v5  ;;  %v542_v11 = vld [vmem:[#allocation2 + $0x44] ss:$8 sps:$4 sm:$0xff]   ;;  %v544_v12 = vld [vmem:[#allocation2 + $0x40] ss:$8 sps:$4 sm:$0xff]   ;;  %v545_v13 = vld [vmem:[#allocation2 + $0x54] ss:$8 sps:$4 sm:$0xff]  }
  0x2b   :  { %517 = vmatmul.mubr.msk.bf16.vlgmr.msra.gmra.mrb[0].mxu0 %vm71_vm1, %v55_v2  ;;  %v547_v14 = vld [vmem:[#allocation2 + $0x50] ss:$8 sps:$4 sm:$0xff]   ;;  %v548_v15 = vld [vmem:[#allocation2 + $0x64] ss:$8 sps:$4 sm:$0xff]   ;;  %v550_v16 = vld [vmem:[#allocation2 + $0x60] ss:$8 sps:$4 sm:$0xff]  }
  0x2c   :  { %v551_v17 = vld [vmem:[#allocation2 + $0x74] ss:$8 sps:$4 sm:$0xff]   ;;  %v553_v18 = vld [vmem:[#allocation2 + $0x70] ss:$8 sps:$4 sm:$0xff]   ;;  %v628_v19 = vmov 0   ;;  %v554_v20 = vld [vmem:[#allocation4 + $0x40] sm:$0xff]  }
  0x2d   :  { %228 = vmatpush1.bf16.msra.mxu1 %v535_v6  ;;  %257 = vmatprep.mubr.bf16.mxu1 %v628_v19  ;;  %v555_v21 = vld [vmem:[#allocation4] sm:$0xff]   ;;  %v556_v22 = vld [vmem:[#allocation4 + $0x48] sm:$0xff]   ;;  %v558_v24 = vld [vmem:[#allocation4 + $0x50] sm:$0xff]   ;;  %v136_v45 = vshrl.u32 %v135_v44, 7 }
  0x2e   :  { %229 = vmatprep.subr.bf16.mxu1 %v536_v7  ;;  %492 = vmatprep.subr.bf16.mxu0 %v554_v20  ;;  %v557_v23 = vld [vmem:[#allocation4 + $0x8] sm:$0xff]   ;;  %v559_v25 = vld [vmem:[#allocation4 + $0x10] sm:$0xff]   ;;  %v560_v26 = vld [vmem:[#allocation4 + $0x58] sm:$0xff]  }
  0x2f   :  { %493 = vmatpush3.bf16.msra.mxu0 %v555_v21  ;;  %v561_v27 = vld [vmem:[#allocation4 + $0x18] sm:$0xff]   ;;  %v562_v28 = vld [vmem:[#allocation4 + $0x60] sm:$0xff]   ;;  %v564_v30 = vld [vmem:[#allocation4 + $0x68] sm:$0xff]   ;;  %v137_v46 = vsub.s32 0, %v136_v45  ;;  %v141_v48 = vsub.s32 1, %v136_v45 }
  0x30   :  { %494 = vmatprep.subr.bf16.mxu0 %v556_v22  ;;  %v563_v29 = vld [vmem:[#allocation4 + $0x20] sm:$0xff]   ;;  %v565_v31 = vld [vmem:[#allocation4 + $0x28] sm:$0xff]   ;;  %v566_v40 = vld [vmem:[#allocation4 + $0x70] sm:$0xff]  }
  0x31   :  { %230 = vmatpush1.bf16.msra.mxu1 %v538_v8  ;;  %v454_v32 = vld [vmem:[%s713_s2] ss:$0 sm:$0xff]  ;;  %v567_v41 = vld [vmem:[#allocation4 + $0x30] sm:$0xff]   ;;  %v568_v42 = vld [vmem:[#allocation4 + $0x78] sm:$0xff]  }
  0x32   :  { %231 = vmatprep.subr.bf16.mxu1 %v539_v9  ;;  %v569_v43 = vld [vmem:[#allocation4 + $0x38] sm:$0xff]   ;;  %v133_v47 = vld [vmem:[%s715_s4] sm:$0x3] }
  0x33   :  { %495 = vmatpush3.bf16.msra.mxu0 %v557_v23  ;;  %v138_v49 = vrot.slane %v133_v47, %v137_v46  ;;  %v142_v50 = vrot.slane %v133_v47, %v141_v48  ;;  %v473_v62 = vld [vmem:[%s717_s6] ss:$0 sm:$0xff] }
  0x34   :  { %496 = vmatprep.subr.bf16.mxu0 %v558_v24 }
  0x35   :  { %232 = vmatpush1.bf16.msra.mxu1 %v541_v10 }
  0x36   :  { %233 = vmatprep.subr.bf16.mxu1 %v542_v11 }
  0x37   :  { %497 = vmatpush3.bf16.msra.mxu0 %v559_v25 }
  0x38   :  { %498 = vmatprep.subr.bf16.mxu0 %v560_v26 }
  0x39   :  { %234 = vmatpush1.bf16.msra.mxu1 %v544_v12 }
  0x3a   :  { %235 = vmatprep.subr.bf16.mxu1 %v545_v13 }
  0x3b   :  { %499 = vmatpush3.bf16.msra.mxu0 %v561_v27 }
  0x3c   :  { %500 = vmatprep.subr.bf16.mxu0 %v562_v28 }
  0x3d   :  { %236 = vmatpush1.bf16.msra.mxu1 %v547_v14 }
  0x3e   :  { %237 = vmatprep.subr.bf16.mxu1 %v548_v15 }
  0x3f   :  { %501 = vmatpush3.bf16.msra.mxu0 %v563_v29 }
  0x40   :  { %502 = vmatprep.subr.bf16.mxu0 %v564_v30 }
  0x41   :  { %238 = vmatpush1.bf16.msra.mxu1 %v550_v16 }
  0x42   :  { %239 = vmatprep.subr.bf16.mxu1 %v551_v17 }
  0x43   :  { %503 = vmatpush3.bf16.msra.mxu0 %v565_v31 }
  0x44   :  { %504 = vmatprep.subr.bf16.mxu0 %v566_v40 }
  0x45   :  { %240 = vmatpush1.bf16.msra.mxu1 %v553_v18 }
  0x47   :  { %505 = vmatpush3.bf16.msra.mxu0 %v567_v41 }
  0x48   :  { %506 = vmatprep.subr.bf16.mxu0 %v568_v42 }
  0x4b   :  { %507 = vmatpush3.bf16.msra.mxu0 %v569_v43 }
  0xfe   :  { %v109_v33 = vpop.f32.mrb[0].mxu0 }
  0xff   :  { %v110_v34 = vadd.f32 %v454_v32, %v109_v33  ;;  %v518_v35 = vpop.f32.mrb[1].mxu0 }
 0x100   :  { %v112_v36 = vpop.f32.mrb[2].mxu0 }
 0x101   :  { %v115_v37 = vmax.f32 %v110_v34, 0.0  ;;  %v519_v38 = vpop.f32.mrb[3].mxu0 }
 0x103   :  { %v116_v39 = vpack.c.bf16 %v115_v37, %v115_v37 }
 0x105   :  { %258 = vmatmul.mubr.bf16.vlgmr.msra.gmra.mrb[0].mxu1 %v116_v39 }
 0x1d8   :  { %v259_v51 = vpop.f32.mrb[0].mxu1 }
 0x1d9   :  { %v260_v52 = vadd.f32 %v259_v51, %v138_v49  ;;  %v261_v53 = vpop.f32.mrb[1].mxu1 }
 0x1da   :  { %v262_v54 = vadd.f32 %v261_v53, %v142_v50  ;;  %v263_v55 = vpop.f32.mrb[2].mxu1 }
 0x1db   :  { %v266_v56 = vmax.f32 %v260_v52, 0.0  ;;  %v264_v57 = vpop.f32.mrb[3].mxu1 }
 0x1dc   :  { %v267_v58 = vmax.f32 %v262_v54, 0.0 }
 0x1dd   :  { %v268_v60 = vpack.c.bf16 %v266_v56, %v266_v56 }
 0x1de   :  { %v269_v59 = vpack.c.bf16 %v267_v58, %v267_v58 }
 0x1e0   :  { %437 = vmatprep.mubr.bf16.mxu0 %v269_v59 }
 0x1e1   :  { %438 = vmatmul.mubr.bf16.vlgmr.msra.gmra.mrb[4].mxu0 %v268_v60 }
 0x2b4   :  { %v508_v61 = vpop.f32.mrb[4].mxu0 }
 0x2b5   :  { %v509_v63 = vpop.f32.mrb[5].mxu0 }
 0x2b6   :  { %v510_v0 = vadd.f32 %v509_v63, %v508_v61  ;;  %v511_v1 = vpop.f32.mrb[6].mxu0 }
 0x2b7   :  { %v512_v2 = vpop.f32.mrb[7].mxu0 }
 0x2b8   :  { %v440_v3 = vadd.f32 %v510_v0, %v473_v62 }
 0x2ba   :  { %570 = vtanh.f32 %v440_v3 }
 0x2c4   :  { %v571_v4 = vpop.eup %570 }
 0x2c5   :  { %v446_v5 = vpack.c.bf16 %v571_v4, %v571_v4 }
 0x2c7   :  { %447 = vst [vmem:[%s718_s7] sm:$0xf] %v446_v5 }
 0x2c8   :  { %452 = vsyncpa [#allocation3], 1 }
 0x2c9   :  { %453 = vsyncpa [#allocation5], 1 }

</bundles_post_ra>
